<compile_context>
chip_gen: v7x
topology: tpu7x:2x2x1
jax: 0.10.0
libtpu: 0.0.40
codegen_flags: <defaults>
</compile_context>

<pallas_src>
import jax
import jax.numpy as jnp
from jax.experimental import pallas as pl
from jax.experimental.pallas import tpu as pltpu


def _rup(x, m):
    return ((x + m - 1) // m) * m


def _cdiv(a, b):
    return -(-a // b)


# --------------------------- parameter construction ------------------------

def _init_linear(key, n_variants, din, dout):
    """Deterministic nn.Linear-style init: U(-1/sqrt(din), 1/sqrt(din))."""
    kw, kb = jax.random.split(key)
    bound = 1.0 / (din ** 0.5)
    W = jax.random.uniform(kw, (n_variants, din, dout), jnp.float32, -bound, bound)
    b = jax.random.uniform(kb, (n_variants, 1, dout), jnp.float32, -bound, bound)
    return W, b


def build_cissvae_params(key, *, input_dim, hidden_dims, layer_order_enc,
                         layer_order_dec, latent_shared, latent_dim,
                         output_shared, num_clusters):
    params = {"enc": [], "dec": []}
    keys = iter(jax.random.split(key, 64))

    in_f = input_dim
    for out_f, ltype in zip(hidden_dims, layer_order_enc):
        shared = ltype.lower() in ("shared", "s")
        n_var = 1 if shared else num_clusters
        W, b = _init_linear(next(keys), n_var, in_f, out_f)
        params["enc"].append((W, b, shared))
        in_f = out_f

    n_var = 1 if latent_shared else num_clusters
    Wm, bm = _init_linear(next(keys), n_var, in_f, latent_dim)
    Wl, bl = _init_linear(next(keys), n_var, in_f, latent_dim)
    params["mu"] = (Wm, bm, latent_shared)
    params["logvar"] = (Wl, bl, latent_shared)

    in_f = latent_dim
    for out_f, ltype in zip(hidden_dims[::-1], layer_order_dec):
        shared = ltype.lower() in ("shared", "s")
        n_var = 1 if shared else num_clusters
        W, b = _init_linear(next(keys), n_var, in_f, out_f)
        params["dec"].append((W, b, shared))
        in_f = out_f

    n_var = 1 if output_shared else num_clusters
    Wf, bf = _init_linear(next(keys), n_var, in_f, input_dim)
    params["final"] = (Wf, bf, output_shared)
    return params


# ------------------------------ forward pass --------------------------------

def cissvae_forward(params, x, cluster_labels, eps, *, row_tile=None):
    """Returns (recon, mu, logvar) exactly like CISSVAE.forward.

    eps plays the role of torch.randn_like(std) in reparameterize()
    (randomness is externalized so the kernel is deterministic/testable).
    """
    B, input_dim = x.shape
    latent_dim = eps.shape[1]

    layers = (list(params["enc"]) + [params["mu"], params["logvar"]]
              + list(params["dec"]) + [params["final"]])
    n_enc = len(params["enc"])
    n_dec = len(params["dec"])
    n_layers = len(layers)
    num_clusters = max(int(W.shape[0]) for W, _, _ in layers)

    # ---- tiling -------------------------------------------------------------
    if row_tile is None:
        row_tile = min(256, _rup(B, 8))      # >=8 sublanes (f32); bigger at scale
    TB = row_tile
    T = _cdiv(B, TB) + num_clusters          # static upper bound on used tiles
    Bp = T * TB

    din_p = _rup(input_dim, 128)
    lat_p = _rup(latent_dim, 128)

    # ---- pad weights to lane-dense (multiple-of-128) feature dims -----------
    padded = []
    for W, b, shared in layers:
        nvar, din, dout = W.shape
        dp, op = _rup(din, 128), _rup(dout, 128)
        Wp = jnp.zeros((nvar, dp, op), jnp.float32).at[:, :din, :dout].set(W)
        bp = jnp.zeros((nvar, 1, op), jnp.float32).at[:, :, :dout].set(b)
        padded.append((Wp, bp, shared))

    # ---- group rows by cluster (each tile holds exactly one cluster) --------
    labels = jnp.clip(cluster_labels.astype(jnp.int32), 0, num_clusters - 1)
    cluster_ids = jnp.arange(num_clusters, dtype=jnp.int32)
    counts = jnp.sum(labels[:, None] == cluster_ids[None, :], axis=0).astype(jnp.int32)
    padded_counts = ((counts + TB - 1) // TB) * TB
    pad_end = jnp.cumsum(padded_counts).astype(jnp.int32)
    pad_start = pad_end - padded_counts
    grp_start = jnp.cumsum(counts).astype(jnp.int32) - counts

    sort_idx = jnp.argsort(labels, stable=True)
    sorted_labels = labels[sort_idx]
    rank = jnp.arange(B, dtype=jnp.int32) - grp_start[sorted_labels]
    dest_sorted = pad_start[sorted_labels] + rank
    row_dest = jnp.zeros((B,), jnp.int32).at[sort_idx].set(dest_sorted)

    tile_start = jnp.arange(T, dtype=jnp.int32) * TB
    tile_cluster = jnp.searchsorted(pad_end, tile_start, side="right").astype(jnp.int32)
    tile_cluster = jnp.minimum(tile_cluster, num_clusters - 1)

    x_feat = jnp.pad(x.astype(jnp.float32), ((0, 0), (0, din_p - input_dim)))
    eps_feat = jnp.pad(eps.astype(jnp.float32), ((0, 0), (0, lat_p - latent_dim)))
    x_p = jnp.zeros((Bp, din_p), jnp.float32).at[row_dest].set(x_feat)
    eps_p = jnp.zeros((Bp, lat_p), jnp.float32).at[row_dest].set(eps_feat)

    # ---- fused kernel --------------------------------------------------------
    def kernel(tile_c_ref, x_ref, eps_ref, *refs):
        del tile_c_ref  # routing is fully handled by the weight index_maps
        wb = refs[: 2 * n_layers]
        recon_ref, mu_ref, logvar_ref = refs[2 * n_layers:]

        def dense(h, i, relu):
            w = wb[2 * i][0]          # (din_p, dout_p): this tile's cluster slab
            bias = wb[2 * i + 1][0]   # (1, dout_p)
            # Note: on v6e/v7x, casting h/w to bfloat16 here (keeping the f32
            # accumulation) would use the fast bf16 MXU path; kept f32 so the
            # numerics match the PyTorch/f32 reference exactly.
            y = jnp.dot(h, w, preferred_element_type=jnp.float32) + bias
            return jnp.maximum(y, 0.0) if relu else y

        h = x_ref[...]
        li = 0
        for _ in range(n_enc):
            h = dense(h, li, True)
            li += 1
        mu = dense(h, li, False)
        logvar = dense(h, li + 1, False)
        li += 2
        z = mu + eps_ref[...] * jnp.exp(0.5 * logvar)   # reparameterize (EUP)
        h = z
        for _ in range(n_dec):
            h = dense(h, li, True)
            li += 1
        recon = dense(h, li, False)

        recon_ref[...] = recon.astype(recon_ref.dtype)
        mu_ref[...] = mu.astype(mu_ref.dtype)
        logvar_ref[...] = logvar.astype(logvar_ref.dtype)

    def _rows_map(t, tc):
        return (t, 0)

    def _shared_map(t, tc):
        return (0, 0, 0)

    def _routed_map(t, tc):
        return (tc[t], 0, 0)

    in_specs = [
        pl.BlockSpec((TB, din_p), _rows_map),
        pl.BlockSpec((TB, lat_p), _rows_map),
    ]
    flat_wb = []
    for Wp, bp, shared in padded:
        wmap = _shared_map if shared else _routed_map
        in_specs.append(pl.BlockSpec((1,) + tuple(Wp.shape[1:]), wmap))
        in_specs.append(pl.BlockSpec((1,) + tuple(bp.shape[1:]), wmap))
        flat_wb += [Wp, bp]

    out_specs = (
        pl.BlockSpec((TB, din_p), _rows_map),
        pl.BlockSpec((TB, lat_p), _rows_map),
        pl.BlockSpec((TB, lat_p), _rows_map),
    )
    out_shape = (
        jax.ShapeDtypeStruct((Bp, din_p), jnp.float32),
        jax.ShapeDtypeStruct((Bp, lat_p), jnp.float32),
        jax.ShapeDtypeStruct((Bp, lat_p), jnp.float32),
    )

    # VMEM budget: one variant per layer resident + double-buffered row tiles,
    # with headroom for live activations; capped at v7x's 64 MiB per core.
    wb_bytes = sum(int(Wp.shape[1]) * int(Wp.shape[2]) * 4 + int(bp.shape[2]) * 4
                   for Wp, bp, _ in padded)
    max_feat = max([din_p, lat_p] + [int(Wp.shape[2]) for Wp, _, _ in padded])
    tile_bytes = TB * (2 * din_p + 4 * lat_p) * 4
    vmem_limit = int(min(64 * 1024 * 1024,
                         max(8 * 1024 * 1024,
                             2 * (wb_bytes + tile_bytes) + 8 * TB * max_feat * 4)))

    recon_p, mu_p, logvar_p = pl.pallas_call(
        kernel,
        out_shape=out_shape,
        grid_spec=pltpu.PrefetchScalarGridSpec(
            num_scalar_prefetch=1,
            grid=(T,),
            in_specs=in_specs,
            out_specs=out_specs,
        ),
        compiler_params=pltpu.CompilerParams(
            dimension_semantics=("parallel",),
            vmem_limit_bytes=vmem_limit,
        ),
    )(tile_cluster, x_p, eps_p, *flat_wb)

    # Un-group (back to original row order) and drop feature padding.
    recon = recon_p[row_dest, :input_dim].astype(x.dtype)
    mu = mu_p[row_dest, :latent_dim]
    logvar = logvar_p[row_dest, :latent_dim]
    return recon, mu, logvar


# ------------------------- pure-JAX reference (check) -----------------------

def _ref_linear(x, labels, W, b, relu, shared):
    hp = jax.lax.Precision.HIGHEST
    if shared:
        y = jnp.dot(x, W[0], precision=hp) + b[0]
    else:
        Wg = W[labels]            # (B, din, dout)
        bg = b[labels][:, 0, :]   # (B, dout)
        y = jnp.einsum("bd,bde->be", x, Wg, precision=hp) + bg
    return jnp.maximum(y, 0.0) if relu else y


def cissvae_forward_ref(params, x, cluster_labels, eps):
    labels = cluster_labels.astype(jnp.int32)
    h = x
    for W, b, shared in params["enc"]:
        h = _ref_linear(h, labels, W, b, True, shared)
    Wm, bm, sm = params["mu"]
    Wl, bl, sl = params["logvar"]
    mu = _ref_linear(h, labels, Wm, bm, False, sm)
    logvar = _ref_linear(h, labels, Wl, bl, False, sl)
    z = mu + eps * jnp.exp(0.5 * logvar)
    h = z
    for W, b, shared in params["dec"]:
        h = _ref_linear(h, labels, W, b, True, shared)
    Wf, bf, sf = params["final"]
    recon = _ref_linear(h, labels, Wf, bf, False, sf)
    return recon, mu, logvar


# ----------------------------------- main ------------------------------------

if __name__ == "__main__":
    # Small configuration consistent with the module's __init__.
    input_dim = 16
    hidden_dims = [32, 16]
    layer_order_enc = ["shared", "unshared"]
    layer_order_dec = ["unshared", "shared"]
    latent_shared = True
    latent_dim = 8
    output_shared = False
    num_clusters = 3
    batch = 8

    root = jax.random.PRNGKey(0)
    k_params, k_x, k_labels, k_eps = jax.random.split(root, 4)

    params = build_cissvae_params(
        k_params,
        input_dim=input_dim, hidden_dims=hidden_dims,
        layer_order_enc=layer_order_enc, layer_order_dec=layer_order_dec,
        latent_shared=latent_shared, latent_dim=latent_dim,
        output_shared=output_shared, num_clusters=num_clusters)

    x = jax.random.normal(k_x, (batch, input_dim), jnp.float32)
    cluster_labels = jax.random.randint(k_labels, (batch,), 0, num_clusters, jnp.int32)
    # TODO(synk): torch.randn_like inside reparameterize is replaced by an
    # externally supplied deterministic eps (same distribution, fixed seed).
    eps = jax.random.normal(k_eps, (batch, latent_dim), jnp.float32)

    fwd = jax.jit(lambda xx, ll, ee: cissvae_forward(params, xx, ll, ee))
    recon, mu, logvar = fwd(x, cluster_labels, eps)
    jax.block_until_ready((recon, mu, logvar))

    r_ref, m_ref, lv_ref = cissvae_forward_ref(params, x, cluster_labels, eps)
    assert recon.shape == (batch, input_dim)
    assert mu.shape == (batch, latent_dim) and logvar.shape == (batch, latent_dim)
    assert jnp.allclose(mu, m_ref, rtol=1e-4, atol=1e-4)
    assert jnp.allclose(logvar, lv_ref, rtol=1e-4, atol=1e-4)
    assert jnp.allclose(recon, r_ref, rtol=1e-4, atol=1e-4)

    print("KERNEL_OK")
</pallas_src>

<mosaic_0001>
module attributes {stable_mosaic.version = 11 : i64} {
  func.func @kernel(%arg0: i32, %arg1: memref<4xi32, #tpu.memory_space<smem>>, %arg2: memref<8x128xf32, #tpu.memory_space<vmem>>, %arg3: memref<8x128xf32, #tpu.memory_space<vmem>>, %arg4: memref<1x128x128xf32, #tpu.memory_space<vmem>>, %arg5: memref<1x1x128xf32, #tpu.memory_space<vmem>>, %arg6: memref<1x128x128xf32, #tpu.memory_space<vmem>>, %arg7: memref<1x1x128xf32, #tpu.memory_space<vmem>>, %arg8: memref<1x128x128xf32, #tpu.memory_space<vmem>>, %arg9: memref<1x1x128xf32, #tpu.memory_space<vmem>>, %arg10: memref<1x128x128xf32, #tpu.memory_space<vmem>>, %arg11: memref<1x1x128xf32, #tpu.memory_space<vmem>>, %arg12: memref<1x128x128xf32, #tpu.memory_space<vmem>>, %arg13: memref<1x1x128xf32, #tpu.memory_space<vmem>>, %arg14: memref<1x128x128xf32, #tpu.memory_space<vmem>>, %arg15: memref<1x1x128xf32, #tpu.memory_space<vmem>>, %arg16: memref<1x128x128xf32, #tpu.memory_space<vmem>>, %arg17: memref<1x1x128xf32, #tpu.memory_space<vmem>>, %arg18: memref<8x128xf32, #tpu.memory_space<vmem>>, %arg19: memref<8x128xf32, #tpu.memory_space<vmem>>, %arg20: memref<8x128xf32, #tpu.memory_space<vmem>>) attributes {dimension_semantics = [#tpu.dimension_semantics<parallel>], iteration_bounds = array<i64: 4>, scalar_prefetch = 1 : i64, scratch_operands = 0 : i64, tpu.core_type = #tpu.core_type<tc>, window_params = [{transform_indices = @transform_0, window_bounds = array<i64: 8, 128>}, {transform_indices = @transform_1, window_bounds = array<i64: 8, 128>}, {pipeline_mode = #tpu.pipeline_mode<synchronous>, transform_indices = @transform_2, window_bounds = array<i64: 1, 128, 128>}, {pipeline_mode = #tpu.pipeline_mode<synchronous>, transform_indices = @transform_3, window_bounds = array<i64: 1, 1, 128>}, {transform_indices = @transform_4, window_bounds = array<i64: 1, 128, 128>}, {transform_indices = @transform_5, window_bounds = array<i64: 1, 1, 128>}, {pipeline_mode = #tpu.pipeline_mode<synchronous>, transform_indices = @transform_6, window_bounds = array<i64: 1, 128, 128>}, {pipeline_mode = #tpu.pipeline_mode<synchronous>, transform_indices = @transform_7, window_bounds = array<i64: 1, 1, 128>}, {pipeline_mode = #tpu.pipeline_mode<synchronous>, transform_indices = @transform_8, window_bounds = array<i64: 1, 128, 128>}, {pipeline_mode = #tpu.pipeline_mode<synchronous>, transform_indices = @transform_9, window_bounds = array<i64: 1, 1, 128>}, {transform_indices = @transform_10, window_bounds = array<i64: 1, 128, 128>}, {transform_indices = @transform_11, window_bounds = array<i64: 1, 1, 128>}, {pipeline_mode = #tpu.pipeline_mode<synchronous>, transform_indices = @transform_12, window_bounds = array<i64: 1, 128, 128>}, {pipeline_mode = #tpu.pipeline_mode<synchronous>, transform_indices = @transform_13, window_bounds = array<i64: 1, 1, 128>}, {transform_indices = @transform_14, window_bounds = array<i64: 1, 128, 128>}, {transform_indices = @transform_15, window_bounds = array<i64: 1, 1, 128>}, {transform_indices = @transform_16, window_bounds = array<i64: 8, 128>}, {transform_indices = @transform_17, window_bounds = array<i64: 8, 128>}, {transform_indices = @transform_18, window_bounds = array<i64: 8, 128>}]} {
    %c0 = arith.constant 0 : index
    %c0_0 = arith.constant 0 : index
    %0 = vector.load %arg2[%c0, %c0_0] : memref<8x128xf32, #tpu.memory_space<vmem>>, vector<8x128xf32>
    %c0_1 = arith.constant 0 : index
    %c0_2 = arith.constant 0 : index
    %c0_3 = arith.constant 0 : index
    %1 = vector.load %arg4[%c0_1, %c0_2, %c0_3] : memref<1x128x128xf32, #tpu.memory_space<vmem>>, vector<1x128x128xf32>
    %2 = vector.shape_cast %1 : vector<1x128x128xf32> to vector<128x128xf32>
    %c0_4 = arith.constant 0 : index
    %c0_5 = arith.constant 0 : index
    %c0_6 = arith.constant 0 : index
    %3 = vector.load %arg5[%c0_4, %c0_5, %c0_6] : memref<1x1x128xf32, #tpu.memory_space<vmem>>, vector<1x1x128xf32>
    %4 = vector.shape_cast %3 : vector<1x1x128xf32> to vector<1x128xf32>
    %cst = arith.constant dense<0.000000e+00> : vector<8x128xf32>
    %5 = tpu.matmul %0, %2, %cst {dimension_numbers = #tpu.dot_dimension_numbers<[1], [0], [0], [1], [0, 0, 1, 1], [], []>} : vector<8x128xf32>, vector<128x128xf32>, vector<8x128xf32> -> vector<8x128xf32>
    %6 = vector.broadcast %4 : vector<1x128xf32> to vector<8x128xf32>
    %7 = arith.addf %5, %6 : vector<8x128xf32>
    %cst_7 = arith.constant 0.000000e+00 : f32
    %8 = vector.broadcast %cst_7 : f32 to vector<8x128xf32>
    %9 = arith.maximumf %7, %8 : vector<8x128xf32>
    %c0_8 = arith.constant 0 : index
    %c0_9 = arith.constant 0 : index
    %c0_10 = arith.constant 0 : index
    %10 = vector.load %arg6[%c0_8, %c0_9, %c0_10] : memref<1x128x128xf32, #tpu.memory_space<vmem>>, vector<1x128x128xf32>
    %11 = vector.shape_cast %10 : vector<1x128x128xf32> to vector<128x128xf32>
    %c0_11 = arith.constant 0 : index
    %c0_12 = arith.constant 0 : index
    %c0_13 = arith.constant 0 : index
    %12 = vector.load %arg7[%c0_11, %c0_12, %c0_13] : memref<1x1x128xf32, #tpu.memory_space<vmem>>, vector<1x1x128xf32>
    %13 = vector.shape_cast %12 : vector<1x1x128xf32> to vector<1x128xf32>
    %cst_14 = arith.constant dense<0.000000e+00> : vector<8x128xf32>
    %14 = tpu.matmul %9, %11, %cst_14 {dimension_numbers = #tpu.dot_dimension_numbers<[1], [0], [0], [1], [0, 0, 1, 1], [], []>} : vector<8x128xf32>, vector<128x128xf32>, vector<8x128xf32> -> vector<8x128xf32>
    %15 = vector.broadcast %13 : vector<1x128xf32> to vector<8x128xf32>
    %16 = arith.addf %14, %15 : vector<8x128xf32>
    %cst_15 = arith.constant 0.000000e+00 : f32
    %17 = vector.broadcast %cst_15 : f32 to vector<8x128xf32>
    %18 = arith.maximumf %16, %17 : vector<8x128xf32>
    %c0_16 = arith.constant 0 : index
    %c0_17 = arith.constant 0 : index
    %c0_18 = arith.constant 0 : index
    %19 = vector.load %arg8[%c0_16, %c0_17, %c0_18] : memref<1x128x128xf32, #tpu.memory_space<vmem>>, vector<1x128x128xf32>
    %20 = vector.shape_cast %19 : vector<1x128x128xf32> to vector<128x128xf32>
    %c0_19 = arith.constant 0 : index
    %c0_20 = arith.constant 0 : index
    %c0_21 = arith.constant 0 : index
    %21 = vector.load %arg9[%c0_19, %c0_20, %c0_21] : memref<1x1x128xf32, #tpu.memory_space<vmem>>, vector<1x1x128xf32>
    %22 = vector.shape_cast %21 : vector<1x1x128xf32> to vector<1x128xf32>
    %cst_22 = arith.constant dense<0.000000e+00> : vector<8x128xf32>
    %23 = tpu.matmul %18, %20, %cst_22 {dimension_numbers = #tpu.dot_dimension_numbers<[1], [0], [0], [1], [0, 0, 1, 1], [], []>} : vector<8x128xf32>, vector<128x128xf32>, vector<8x128xf32> -> vector<8x128xf32>
    %24 = vector.broadcast %22 : vector<1x128xf32> to vector<8x128xf32>
    %25 = arith.addf %23, %24 : vector<8x128xf32>
    %c0_23 = arith.constant 0 : index
    %c0_24 = arith.constant 0 : index
    %c0_25 = arith.constant 0 : index
    %26 = vector.load %arg10[%c0_23, %c0_24, %c0_25] : memref<1x128x128xf32, #tpu.memory_space<vmem>>, vector<1x128x128xf32>
    %27 = vector.shape_cast %26 : vector<1x128x128xf32> to vector<128x128xf32>
    %c0_26 = arith.constant 0 : index
    %c0_27 = arith.constant 0 : index
    %c0_28 = arith.constant 0 : index
    %28 = vector.load %arg11[%c0_26, %c0_27, %c0_28] : memref<1x1x128xf32, #tpu.memory_space<vmem>>, vector<1x1x128xf32>
    %29 = vector.shape_cast %28 : vector<1x1x128xf32> to vector<1x128xf32>
    %cst_29 = arith.constant dense<0.000000e+00> : vector<8x128xf32>
    %30 = tpu.matmul %18, %27, %cst_29 {dimension_numbers = #tpu.dot_dimension_numbers<[1], [0], [0], [1], [0, 0, 1, 1], [], []>} : vector<8x128xf32>, vector<128x128xf32>, vector<8x128xf32> -> vector<8x128xf32>
    %31 = vector.broadcast %29 : vector<1x128xf32> to vector<8x128xf32>
    %32 = arith.addf %30, %31 : vector<8x128xf32>
    %c0_30 = arith.constant 0 : index
    %c0_31 = arith.constant 0 : index
    %33 = vector.load %arg3[%c0_30, %c0_31] : memref<8x128xf32, #tpu.memory_space<vmem>>, vector<8x128xf32>
    %cst_32 = arith.constant 5.000000e-01 : f32
    %34 = vector.broadcast %cst_32 : f32 to vector<8x128xf32>
    %35 = arith.mulf %34, %32 : vector<8x128xf32>
    %36 = math.exp %35 : vector<8x128xf32>
    %37 = arith.mulf %33, %36 : vector<8x128xf32>
    %38 = arith.addf %25, %37 : vector<8x128xf32>
    %c0_33 = arith.constant 0 : index
    %c0_34 = arith.constant 0 : index
    %c0_35 = arith.constant 0 : index
    %39 = vector.load %arg12[%c0_33, %c0_34, %c0_35] : memref<1x128x128xf32, #tpu.memory_space<vmem>>, vector<1x128x128xf32>
    %40 = vector.shape_cast %39 : vector<1x128x128xf32> to vector<128x128xf32>
    %c0_36 = arith.constant 0 : index
    %c0_37 = arith.constant 0 : index
    %c0_38 = arith.constant 0 : index
    %41 = vector.load %arg13[%c0_36, %c0_37, %c0_38] : memref<1x1x128xf32, #tpu.memory_space<vmem>>, vector<1x1x128xf32>
    %42 = vector.shape_cast %41 : vector<1x1x128xf32> to vector<1x128xf32>
    %cst_39 = arith.constant dense<0.000000e+00> : vector<8x128xf32>
    %43 = tpu.matmul %38, %40, %cst_39 {dimension_numbers = #tpu.dot_dimension_numbers<[1], [0], [0], [1], [0, 0, 1, 1], [], []>} : vector<8x128xf32>, vector<128x128xf32>, vector<8x128xf32> -> vector<8x128xf32>
    %44 = vector.broadcast %42 : vector<1x128xf32> to vector<8x128xf32>
    %45 = arith.addf %43, %44 : vector<8x128xf32>
    %cst_40 = arith.constant 0.000000e+00 : f32
    %46 = vector.broadcast %cst_40 : f32 to vector<8x128xf32>
    %47 = arith.maximumf %45, %46 : vector<8x128xf32>
    %c0_41 = arith.constant 0 : index
    %c0_42 = arith.constant 0 : index
    %c0_43 = arith.constant 0 : index
    %48 = vector.load %arg14[%c0_41, %c0_42, %c0_43] : memref<1x128x128xf32, #tpu.memory_space<vmem>>, vector<1x128x128xf32>
    %49 = vector.shape_cast %48 : vector<1x128x128xf32> to vector<128x128xf32>
    %c0_44 = arith.constant 0 : index
    %c0_45 = arith.constant 0 : index
    %c0_46 = arith.constant 0 : index
    %50 = vector.load %arg15[%c0_44, %c0_45, %c0_46] : memref<1x1x128xf32, #tpu.memory_space<vmem>>, vector<1x1x128xf32>
    %51 = vector.shape_cast %50 : vector<1x1x128xf32> to vector<1x128xf32>
    %cst_47 = arith.constant dense<0.000000e+00> : vector<8x128xf32>
    %52 = tpu.matmul %47, %49, %cst_47 {dimension_numbers = #tpu.dot_dimension_numbers<[1], [0], [0], [1], [0, 0, 1, 1], [], []>} : vector<8x128xf32>, vector<128x128xf32>, vector<8x128xf32> -> vector<8x128xf32>
    %53 = vector.broadcast %51 : vector<1x128xf32> to vector<8x128xf32>
    %54 = arith.addf %52, %53 : vector<8x128xf32>
    %cst_48 = arith.constant 0.000000e+00 : f32
    %55 = vector.broadcast %cst_48 : f32 to vector<8x128xf32>
    %56 = arith.maximumf %54, %55 : vector<8x128xf32>
    %c0_49 = arith.constant 0 : index
    %c0_50 = arith.constant 0 : index
    %c0_51 = arith.constant 0 : index
    %57 = vector.load %arg16[%c0_49, %c0_50, %c0_51] : memref<1x128x128xf32, #tpu.memory_space<vmem>>, vector<1x128x128xf32>
    %58 = vector.shape_cast %57 : vector<1x128x128xf32> to vector<128x128xf32>
    %c0_52 = arith.constant 0 : index
    %c0_53 = arith.constant 0 : index
    %c0_54 = arith.constant 0 : index
    %59 = vector.load %arg17[%c0_52, %c0_53, %c0_54] : memref<1x1x128xf32, #tpu.memory_space<vmem>>, vector<1x1x128xf32>
    %60 = vector.shape_cast %59 : vector<1x1x128xf32> to vector<1x128xf32>
    %cst_55 = arith.constant dense<0.000000e+00> : vector<8x128xf32>
    %61 = tpu.matmul %56, %58, %cst_55 {dimension_numbers = #tpu.dot_dimension_numbers<[1], [0], [0], [1], [0, 0, 1, 1], [], []>} : vector<8x128xf32>, vector<128x128xf32>, vector<8x128xf32> -> vector<8x128xf32>
    %62 = vector.broadcast %60 : vector<1x128xf32> to vector<8x128xf32>
    %63 = arith.addf %61, %62 : vector<8x128xf32>
    %c0_56 = arith.constant 0 : index
    %c0_57 = arith.constant 0 : index
    %64 = vector.load %arg18[%c0_56, %c0_57] : memref<8x128xf32, #tpu.memory_space<vmem>>, vector<8x128xf32>
    tpu.vector_store %arg18[%c0_56, %c0_57], %63 {strides = array<i32>} : memref<8x128xf32, #tpu.memory_space<vmem>>, vector<8x128xf32>,
    %c0_58 = arith.constant 0 : index
    %c0_59 = arith.constant 0 : index
    %65 = vector.load %arg19[%c0_58, %c0_59] : memref<8x128xf32, #tpu.memory_space<vmem>>, vector<8x128xf32>
    tpu.vector_store %arg19[%c0_58, %c0_59], %25 {strides = array<i32>} : memref<8x128xf32, #tpu.memory_space<vmem>>, vector<8x128xf32>,
    %c0_60 = arith.constant 0 : index
    %c0_61 = arith.constant 0 : index
    %66 = vector.load %arg20[%c0_60, %c0_61] : memref<8x128xf32, #tpu.memory_space<vmem>>, vector<8x128xf32>
    tpu.vector_store %arg20[%c0_60, %c0_61], %32 {strides = array<i32>} : memref<8x128xf32, #tpu.memory_space<vmem>>, vector<8x128xf32>,
    return
  }
  func.func @transform_0(%arg0: i32, %arg1: memref<4xi32, #tpu.memory_space<smem>>) -> (i32, i32) {
    %c0_i32 = arith.constant 0 : i32
    %c0_i32_0 = arith.constant 0 : i32
    return %arg0, %c0_i32 : i32, i32
  }
  func.func @transform_1(%arg0: i32, %arg1: memref<4xi32, #tpu.memory_space<smem>>) -> (i32, i32) {
    %c0_i32 = arith.constant 0 : i32
    %c0_i32_0 = arith.constant 0 : i32
    return %arg0, %c0_i32 : i32, i32
  }
  func.func @transform_2(%arg0: i32, %arg1: memref<4xi32, #tpu.memory_space<smem>>) -> (i32, i32, i32) {
    %c0_i32 = arith.constant 0 : i32
    %c0_i32_0 = arith.constant 0 : i32
    %c0_i32_1 = arith.constant 0 : i32
    %c0_i32_2 = arith.constant 0 : i32
    return %c0_i32, %c0_i32_0, %c0_i32_1 : i32, i32, i32
  }
  func.func @transform_3(%arg0: i32, %arg1: memref<4xi32, #tpu.memory_space<smem>>) -> (i32, i32, i32) {
    %c0_i32 = arith.constant 0 : i32
    %c0_i32_0 = arith.constant 0 : i32
    %c0_i32_1 = arith.constant 0 : i32
    %c0_i32_2 = arith.constant 0 : i32
    return %c0_i32, %c0_i32_0, %c0_i32_1 : i32, i32, i32
  }
  func.func @transform_4(%arg0: i32, %arg1: memref<4xi32, #tpu.memory_space<smem>>) -> (i32, i32, i32) {
    %0 = arith.index_cast %arg0 : i32 to index
    %1 = memref.load %arg1[%0] : memref<4xi32, #tpu.memory_space<smem>>
    %c0_i32 = arith.constant 0 : i32
    %c0_i32_0 = arith.constant 0 : i32
    %c0_i32_1 = arith.constant 0 : i32
    return %1, %c0_i32, %c0_i32_0 : i32, i32, i32
  }
  func.func @transform_5(%arg0: i32, %arg1: memref<4xi32, #tpu.memory_space<smem>>) -> (i32, i32, i32) {
    %0 = arith.index_cast %arg0 : i32 to index
    %1 = memref.load %arg1[%0] : memref<4xi32, #tpu.memory_space<smem>>
    %c0_i32 = arith.constant 0 : i32
    %c0_i32_0 = arith.constant 0 : i32
    %c0_i32_1 = arith.constant 0 : i32
    return %1, %c0_i32, %c0_i32_0 : i32, i32, i32
  }
  func.func @transform_6(%arg0: i32, %arg1: memref<4xi32, #tpu.memory_space<smem>>) -> (i32, i32, i32) {
    %c0_i32 = arith.constant 0 : i32
    %c0_i32_0 = arith.constant 0 : i32
    %c0_i32_1 = arith.constant 0 : i32
    %c0_i32_2 = arith.constant 0 : i32
    return %c0_i32, %c0_i32_0, %c0_i32_1 : i32, i32, i32
  }
  func.func @transform_7(%arg0: i32, %arg1: memref<4xi32, #tpu.memory_space<smem>>) -> (i32, i32, i32) {
    %c0_i32 = arith.constant 0 : i32
    %c0_i32_0 = arith.constant 0 : i32
    %c0_i32_1 = arith.constant 0 : i32
    %c0_i32_2 = arith.constant 0 : i32
    return %c0_i32, %c0_i32_0, %c0_i32_1 : i32, i32, i32
  }
  func.func @transform_8(%arg0: i32, %arg1: memref<4xi32, #tpu.memory_space<smem>>) -> (i32, i32, i32) {
    %c0_i32 = arith.constant 0 : i32
    %c0_i32_0 = arith.constant 0 : i32
    %c0_i32_1 = arith.constant 0 : i32
    %c0_i32_2 = arith.constant 0 : i32
    return %c0_i32, %c0_i32_0, %c0_i32_1 : i32, i32, i32
  }
  func.func @transform_9(%arg0: i32, %arg1: memref<4xi32, #tpu.memory_space<smem>>) -> (i32, i32, i32) {
    %c0_i32 = arith.constant 0 : i32
    %c0_i32_0 = arith.constant 0 : i32
    %c0_i32_1 = arith.constant 0 : i32
    %c0_i32_2 = arith.constant 0 : i32
    return %c0_i32, %c0_i32_0, %c0_i32_1 : i32, i32, i32
  }
  func.func @transform_10(%arg0: i32, %arg1: memref<4xi32, #tpu.memory_space<smem>>) -> (i32, i32, i32) {
    %0 = arith.index_cast %arg0 : i32 to index
    %1 = memref.load %arg1[%0] : memref<4xi32, #tpu.memory_space<smem>>
    %c0_i32 = arith.constant 0 : i32
    %c0_i32_0 = arith.constant 0 : i32
    %c0_i32_1 = arith.constant 0 : i32
    return %1, %c0_i32, %c0_i32_0 : i32, i32, i32
  }
  func.func @transform_11(%arg0: i32, %arg1: memref<4xi32, #tpu.memory_space<smem>>) -> (i32, i32, i32) {
    %0 = arith.index_cast %arg0 : i32 to index
    %1 = memref.load %arg1[%0] : memref<4xi32, #tpu.memory_space<smem>>
    %c0_i32 = arith.constant 0 : i32
    %c0_i32_0 = arith.constant 0 : i32
    %c0_i32_1 = arith.constant 0 : i32
    return %1, %c0_i32, %c0_i32_0 : i32, i32, i32
  }
  func.func @transform_12(%arg0: i32, %arg1: memref<4xi32, #tpu.memory_space<smem>>) -> (i32, i32, i32) {
    %c0_i32 = arith.constant 0 : i32
    %c0_i32_0 = arith.constant 0 : i32
    %c0_i32_1 = arith.constant 0 : i32
    %c0_i32_2 = arith.constant 0 : i32
    return %c0_i32, %c0_i32_0, %c0_i32_1 : i32, i32, i32
  }
  func.func @transform_13(%arg0: i32, %arg1: memref<4xi32, #tpu.memory_space<smem>>) -> (i32, i32, i32) {
    %c0_i32 = arith.constant 0 : i32
    %c0_i32_0 = arith.constant 0 : i32
    %c0_i32_1 = arith.constant 0 : i32
    %c0_i32_2 = arith.constant 0 : i32
    return %c0_i32, %c0_i32_0, %c0_i32_1 : i32, i32, i32
  }
  func.func @transform_14(%arg0: i32, %arg1: memref<4xi32, #tpu.memory_space<smem>>) -> (i32, i32, i32) {
    %0 = arith.index_cast %arg0 : i32 to index
    %1 = memref.load %arg1[%0] : memref<4xi32, #tpu.memory_space<smem>>
    %c0_i32 = arith.constant 0 : i32
    %c0_i32_0 = arith.constant 0 : i32
    %c0_i32_1 = arith.constant 0 : i32
    return %1, %c0_i32, %c0_i32_0 : i32, i32, i32
  }
  func.func @transform_15(%arg0: i32, %arg1: memref<4xi32, #tpu.memory_space<smem>>) -> (i32, i32, i32) {
    %0 = arith.index_cast %arg0 : i32 to index
    %1 = memref.load %arg1[%0] : memref<4xi32, #tpu.memory_space<smem>>
    %c0_i32 = arith.constant 0 : i32
    %c0_i32_0 = arith.constant 0 : i32
    %c0_i32_1 = arith.constant 0 : i32
    return %1, %c0_i32, %c0_i32_0 : i32, i32, i32
  }
  func.func @transform_16(%arg0: i32, %arg1: memref<4xi32, #tpu.memory_space<smem>>) -> (i32, i32) {
    %c0_i32 = arith.constant 0 : i32
    %c0_i32_0 = arith.constant 0 : i32
    return %arg0, %c0_i32 : i32, i32
  }
  func.func @transform_17(%arg0: i32, %arg1: memref<4xi32, #tpu.memory_space<smem>>) -> (i32, i32) {
    %c0_i32 = arith.constant 0 : i32
    %c0_i32_0 = arith.constant 0 : i32
    return %arg0, %c0_i32 : i32, i32
  }
  func.func @transform_18(%arg0: i32, %arg1: memref<4xi32, #tpu.memory_space<smem>>) -> (i32, i32) {
    %c0_i32 = arith.constant 0 : i32
    %c0_i32_0 = arith.constant 0 : i32
    return %arg0, %c0_i32 : i32, i32
  }
}

</mosaic_0001>

<bundles_post_ra>
// kernel: custom-call
= control target key start
LH: loop header
LB: loop body
LE: loop exit
PB: predicated region body
PF: predicated region fallthrough
CT: control target
= control target key end

     0   :  { %s6_s0 = inlined_call_operand.vmem [shape: u32[4], index: 0, kind: output, shape index: {}]  }

// kernel: custom-call.10
= control target key start
LH: loop header
LB: loop body
LE: loop exit
PB: predicated region body
PF: predicated region fallthrough
CT: control target
= control target key end

     0   :  { %s6_s0 = inlined_call_operand.hbm [shape: f32[8,16], index: 0, kind: output, shape index: {}]  }

// kernel: _lambda_.1
= control target key start
LH: loop header
LB: loop body
LE: loop exit
PB: predicated region body
PF: predicated region fallthrough
CT: control target
= control target key end

     0   :  { %s2707_s0 = inlined_call_operand.vmem [shape: s32[4], index: 0, kind: input, shape index: {}]   ;;  %s2708_s1 = inlined_call_operand.vmem [shape: f32[32,128], index: 1, kind: input, shape index: {}]   ;;  %s2709_s2 = inlined_call_operand.vmem [shape: f32[32,128], index: 2, kind: input, shape index: {}]   ;;  %s2710_s3 = inlined_call_operand.vmem [shape: f32[1,128,128], index: 3, kind: input, shape index: {}]   ;;  %s2711_s4 = inlined_call_operand.vmem [shape: f32[1,1,128], index: 4, kind: input, shape index: {}]   ;;  %s2712_s5 = inlined_call_operand.vmem [shape: f32[3,128,128], index: 5, kind: input, shape index: {}]   ;;  %s2713_s6 = inlined_call_operand.vmem [shape: f32[3,1,128], index: 6, kind: input, shape index: {}]   ;;  %s2714_s7 = inlined_call_operand.vmem [shape: f32[1,128,128], index: 7, kind: input, shape index: {}]   ;;  %s2715_s8 = inlined_call_operand.vmem [shape: f32[1,1,128], index: 8, kind: input, shape index: {}]   ;;  %s2716_s9 = inlined_call_operand.vmem [shape: f32[1,128,128], index: 9, kind: input, shape index: {}]   ;;  %s2717_s10 = inlined_call_operand.vmem [shape: f32[1,1,128], index: 10, kind: input, shape index: {}]   ;;  %s2718_s11 = inlined_call_operand.vmem [shape: f32[3,128,128], index: 11, kind: input, shape index: {}]   ;;  %s2719_s12 = inlined_call_operand.vmem [shape: f32[3,1,128], index: 12, kind: input, shape index: {}]   ;;  %s2720_s13 = inlined_call_operand.vmem [shape: f32[1,128,128], index: 13, kind: input, shape index: {}]   ;;  %s2721_s14 = inlined_call_operand.vmem [shape: f32[1,1,128], index: 14, kind: input, shape index: {}]   ;;  %s2722_s15 = inlined_call_operand.vmem [shape: f32[3,128,128], index: 15, kind: input, shape index: {}]   ;;  %s2723_s16 = inlined_call_operand.vmem [shape: f32[3,1,128], index: 16, kind: input, shape index: {}]   ;;  %s2724_s17 = inlined_call_operand.vmem [shape: f32[32,128], index: 17, kind: output, shape index: {0}]   ;;  %s2725_s18 = inlined_call_operand.vmem [shape: f32[32,128], index: 18, kind: output, shape index: {1}]   ;;  %s2726_s19 = inlined_call_operand.vmem [shape: f32[32,128], index: 19, kind: output, shape index: {2}]  }
   0x1   :  { %2728 = sst [smem:[#allocation5_spill]] %s2707_s0 }
   0x2   :  { %2729 = sst [smem:[#allocation6_spill]] %s2708_s1  ;;  %s2733_s20 = sld [smem:[#allocation5_spill]] }
   0x3   :  { %2730 = sst [smem:[#allocation7_spill]] %s2709_s2 }
   0x4   :  { %2731 = sst [smem:[#allocation8_spill]] %s2710_s3 }
   0x5   :  { %2732 = sst [smem:[#allocation9_spill]] %s2719_s12 }
   0x8   :  { %s25_s12 = sshll.u32 %s2733_s20, 4  ;;  %s26_s12 = int_to_ptr.vmem [resolvable:$true] %s25_s12 }
   0x9   :  { %s2189_s21 = scalar_lea.vmem %s26_s12, 16  ;;  %p2194_p1 = scmp.lt.s32.totalorder %s26_s12, %s26_s12 }
   0xa   :  { %p2190_p0 = scmp.ne.s32.totalorder %s26_s12, %s2189_s21  ;;  %p2195_p2 = scmp.lt.s32.totalorder %s2189_s21, %s2189_s21 }
   0xc   :  { %p2196_p3 = por %p2195_p2, %p2194_p1 }
   0xe   :  { %p2197_p4 = pnand %p2196_p3, %p2190_p0 }
  0x10   :  { %2200 = shalt.err (!%p2197_p4)  }
  0x11   :  { %s2211_s1 = smov [#allocation3]  }
  0x12   :  { %28 = dma.vmem_to_smem %s26_s12, 16, %s2211_s1, [#allocation2] }
  0x13   :  { %2205 = dma.done.wait [#allocation2], 16 }
  0x14   :  { %2206 = vsyncadd [#allocation2], 4294967280 }
  0x15   :  { %30 = sfence }
  0x16   :  { %s2318_s22 = smov 0  }
  0x17 LB: > { %s2324_s2 = sadd.s32 4294967295, %s2209_s22   ;;  %p1619_p5 = scmp.ge.s32.totalorder %s2209_s22, 1  ;;  %s2209_s22 = sphi %s2318_s22, %s36_s22  }
  0x18   : > { %p610_p6 = scmp.lt.s32.totalorder %s2209_s22, 5 }
  0x1a   : > { %p611_p7 = pnand %p1619_p5, %p610_p6 }
  0x1b   : > { %s2734_s24 = sld [smem:[#allocation8_spill]] (!%p611_p7)  ;;  %v2212_v3 = vmov (!%p611_p7), 0.0|0.0   ;;  %vm2213_vm0 = vmmov (!%p611_p7), 0   ;;  %v2214_v6 = vmov (!%p611_p7), 0.0   ;;  %p704_p9 = scmp.lt.s32.totalorder (!%p611_p7), %s2324_s2, 3  ;;  %v949_v51 = vld [vmem:[%s2714_s7] sm:$0xff] (!%p611_p7) }
  0x1c   : > { %614 = sbr.rel (%p611_p7) target bundleno = 1379 (0x563), region = 84  ;;  %2007 = vmatprep.subr.bf16.mxu0 (!%p611_p7), %v2212_v3  ;;  %1794 = vmatprep.mubr.msk.f32.mxu0 (!%p611_p7), %vm2213_vm0, %v2214_v6  ;;  %s712_s0 = sld [smem:[#allocation3 + %s2324_s2]] (!%p611_p7)  ;;  %v950_v52 = vld [vmem:[%s2714_s7 + $0x8] sm:$0xff] (!%p611_p7)  ;;  %v951_v54 = vld [vmem:[%s2714_s7 + $0x10] sm:$0xff] (!%p611_p7)  ;;  %v952_v55 = vld [vmem:[%s2714_s7 + $0x18] sm:$0xff] (!%p611_p7) }
  0x1d   : > { %2031 = vmatprep.subr.bf16.mxu1 (!%p611_p7), %v2212_v3  ;;  %1829 = vmatprep.mubr.msk.f32.mxu1 (!%p611_p7), %vm2213_vm0, %v2214_v6  ;;  %s2735_s3 = sld [smem:[#allocation6_spill]] (!%p611_p7)  ;;  %v2056_v53 = vpack.c.bf16 (!%p611_p7), %v950_v52, %v949_v51  ;;  %v2059_v56 = vpack.c.bf16 (!%p611_p7), %v952_v55, %v951_v54  ;;  %v953_v57 = vld [vmem:[%s2714_s7 + $0x20] sm:$0xff] (!%p611_p7)  ;;  %v954_v58 = vld [vmem:[%s2714_s7 + $0x28] sm:$0xff] (!%p611_p7)  ;;  %v955_v60 = vld [vmem:[%s2714_s7 + $0x30] sm:$0xff] (!%p611_p7)  ;;  %s2737_s25 = sld [smem:[#allocation9_spill]] (!%p611_p7) }
  0x1e   : > { %v2062_v59 = vpack.c.bf16 (!%p611_p7), %v954_v58, %v953_v57  ;;  %v956_v61 = vld [vmem:[%s2714_s7 + $0x38] sm:$0xff] (!%p611_p7)  ;;  %v957_v63 = vld [vmem:[%s2714_s7 + $0x40] sm:$0xff] (!%p611_p7)  ;;  %s719_s23 = sld [smem:[#allocation3 + %s2324_s2]] (!%p611_p7) }
  0x1f   : > { %v2065_v62 = vpack.c.bf16 (!%p611_p7), %v956_v61, %v955_v60 }
  0x21   : > { %v761_v0 = vld [vmem:[%s2734_s24] sm:$0xff] (!%p611_p7)  ;;  %v762_v1 = vld [vmem:[%s2734_s24 + $0x8] sm:$0xff] (!%p611_p7)  ;;  %v763_v2 = vld [vmem:[%s2734_s24 + $0x10] sm:$0xff] (!%p611_p7) }
  0x22   : > { %v2008_v4 = vpack.c.bf16 (!%p611_p7), %v762_v1, %v761_v0  ;;  %v764_v5 = vld [vmem:[%s2734_s24 + $0x18] sm:$0xff] (!%p611_p7)  ;;  %v765_v8 = vld [vmem:[%s2734_s24 + $0x20] sm:$0xff] (!%p611_p7)  ;;  %v766_v9 = vld [vmem:[%s2734_s24 + $0x28] sm:$0xff] (!%p611_p7)  ;;  %p713_p8 = scmp.lt.s32.totalorder (!%p611_p7), %s712_s0, 2 }
  0x23   : > { %v2011_v7 = vpack.c.bf16 %v764_v5, %v763_v2  ;;  %v2014_v10 = vpack.c.bf16 %v766_v9, %v765_v8  ;;  %v767_v11 = vld [vmem:[%s2734_s24 + $0x30] sm:$0xff]  ;;  %v768_v12 = vld [vmem:[%s2734_s24 + $0x38] sm:$0xff]  ;;  %v769_v14 = vld [vmem:[%s2734_s24 + $0x40] sm:$0xff]  ;;  %s705_s29 = scalar_select %p704_p9, %s2324_s2, 3 }
  0x24   : > { %2009 = vmatpush3.bf16.msra.mxu0 %v2008_v4  ;;  %s2739_s0 = smov (!%p713_p8, %s712_s0), 2  ;;  %v2017_v13 = vpack.c.bf16 %v768_v12, %v767_v11  ;;  %v770_v15 = vld [vmem:[%s2734_s24 + $0x48] sm:$0xff]  ;;  %v771_v22 = vld [vmem:[%s2734_s24 + $0x50] sm:$0xff]  ;;  %v772_v23 = vld [vmem:[%s2734_s24 + $0x58] sm:$0xff]  ;;  %p720_p11 = scmp.lt.s32.totalorder %s719_s23, 2 }
  0x25   : > { %2010 = vmatprep.subr.bf16.mxu0 %v2212_v3  ;;  %s1640_s26 = sshll.u32 %s2739_s0, 7  ;;  %v2020_v21 = vpack.c.bf16 %v770_v15, %v769_v14  ;;  %v2023_v27 = vpack.c.bf16 %v772_v23, %v771_v22  ;;  %v773_v28 = vld [vmem:[%s2734_s24 + $0x60] sm:$0xff]  ;;  %v774_v29 = vld [vmem:[%s2734_s24 + $0x68] sm:$0xff]  ;;  %v775_v34 = vld [vmem:[%s2734_s24 + $0x70] sm:$0xff]  ;;  %s2406_s12 = sshll.u32 %s705_s29, 3 }
  0x26   : > { %s2371_s1 = scalar_lea.vmem %s2712_s5, %s1640_s26  ;;  %v2026_v33 = vpack.c.bf16 %v774_v29, %v773_v28  ;;  %v776_v35 = vld [vmem:[%s2734_s24 + $0x78] sm:$0xff]  ;;  %s707_s26 = scalar_lea.vmem %s2735_s3, %s2406_s12  ;;  %v958_v0 = vld [vmem:[%s2714_s7 + $0x48] sm:$0xff]  ;;  %v959_v2 = vld [vmem:[%s2714_s7 + $0x50] sm:$0xff] }
  0x27   : > { %v855_v16 = vld [vmem:[%s2371_s1] sm:$0xff]  ;;  %v856_v17 = vld [vmem:[%s2371_s1 + $0x8] sm:$0xff]  ;;  %v857_v18 = vld [vmem:[%s2371_s1 + $0x10] sm:$0xff]  ;;  %v2029_v39 = vpack.c.bf16 %v776_v35, %v775_v34  ;;  %v2068_v1 = vpack.c.bf16 %v958_v0, %v957_v63  ;;  %s724_s0 = sld [smem:[#allocation3 + %s2324_s2]]  ;;  %s2743_s23 = smov (!%p720_p11, %s719_s23), 2 }
  0x28   : > { %2012 = vmatpush3.bf16.msra.mxu0 %v2011_v7  ;;  %v2032_v19 = vpack.c.bf16 %v856_v17, %v855_v16  ;;  %v858_v20 = vld [vmem:[%s2371_s1 + $0x18] sm:$0xff]  ;;  %v859_v25 = vld [vmem:[%s2371_s1 + $0x20] sm:$0xff]  ;;  %v860_v26 = vld [vmem:[%s2371_s1 + $0x28] sm:$0xff]  ;;  %s755_s28 = scalar_lea.vmem %s2725_s18, %s2406_s12  ;;  %s759_s20 = scalar_lea.vmem %s2726_s19, %s2406_s12 }
  0x29   : > { %2013 = vmatprep.subr.bf16.mxu0 %v2212_v3  ;;  %v2035_v24 = vpack.c.bf16 %v858_v20, %v857_v18  ;;  %v2038_v30 = vpack.c.bf16 %v860_v26, %v859_v25  ;;  %v861_v31 = vld [vmem:[%s2371_s1 + $0x30] sm:$0xff]  ;;  %v862_v32 = vld [vmem:[%s2371_s1 + $0x38] sm:$0xff]  ;;  %v863_v37 = vld [vmem:[%s2371_s1 + $0x40] sm:$0xff] }
  0x2a   : > { %2033 = vmatpush3.bf16.msra.mxu1 %v2032_v19  ;;  %v2041_v36 = vpack.c.bf16 %v862_v32, %v861_v31  ;;  %v864_v38 = vld [vmem:[%s2371_s1 + $0x48] sm:$0xff]  ;;  %v865_v41 = vld [vmem:[%s2371_s1 + $0x50] sm:$0xff]  ;;  %v866_v42 = vld [vmem:[%s2371_s1 + $0x58] sm:$0xff] }
  0x2b   : > { %2034 = vmatprep.subr.bf16.mxu1 %v2212_v3  ;;  %v2044_v40 = vpack.c.bf16 %v864_v38, %v863_v37  ;;  %v760_v43 = vld [vmem:[%s707_s26] sm:$0xff]  ;;  %v2047_v44 = vpack.c.bf16 %v866_v42, %v865_v41  ;;  %v868_v46 = vld [vmem:[%s2371_s1 + $0x68] sm:$0xff]  ;;  %v869_v48 = vld [vmem:[%s2371_s1 + $0x70] sm:$0xff]  ;;  %s722_s26 = scalar_lea.vmem %s2713_s6, %s2743_s23  ;;  %s2736_s23 = sld [smem:[#allocation7_spill]] }
  0x2c   : > { %2015 = vmatpush3.bf16.msra.mxu0 %v2014_v10  ;;  %v867_v45 = vld [vmem:[%s2371_s1 + $0x60] sm:$0xff]  ;;  %v870_v49 = vld [vmem:[%s2371_s1 + $0x78] sm:$0xff]  ;;  %v962_v8 = vld [vmem:[%s2714_s7 + $0x68] sm:$0xff] }
  0x2d   : > { %2016 = vmatprep.subr.bf16.mxu0 %v2212_v3  ;;  %v2050_v47 = vpack.c.bf16 %v868_v46, %v867_v45  ;;  %v2053_v50 = vpack.c.bf16 %v870_v49, %v869_v48  ;;  %v960_v4 = vld [vmem:[%s2714_s7 + $0x58] sm:$0xff]  ;;  %v961_v7 = vld [vmem:[%s2714_s7 + $0x60] sm:$0xff]  ;;  %v1043_v12 = vld [vmem:[%s2716_s9 + $0x8] sm:$0xff]  ;;  %p725_p10 = scmp.lt.s32.totalorder %s724_s0, 2 }
  0x2e   : > { %2036 = vmatpush3.bf16.msra.mxu1 %v2035_v24  ;;  %v2071_v5 = vpack.c.bf16 %v960_v4, %v959_v2  ;;  %v2074_v9 = vpack.c.bf16 %v962_v8, %v961_v7  ;;  %v1631_v10 = vld [vmem:[%s2711_s4] ss:$0 sm:$0xff]  ;;  %v1044_v18 = vld [vmem:[%s2716_s9 + $0x10] sm:$0xff]  ;;  %v1045_v19 = vld [vmem:[%s2716_s9 + $0x18] sm:$0xff] }
  0x2f   : > { %2037 = vmatprep.subr.bf16.mxu1 %v2212_v3  ;;  %v1042_v11 = vld [vmem:[%s2716_s9] sm:$0xff]  ;;  %v2083_v20 = vpack.c.bf16 %v1045_v19, %v1044_v18  ;;  %v1047_v22 = vld [vmem:[%s2716_s9 + $0x28] sm:$0xff]  ;;  %v1048_v24 = vld [vmem:[%s2716_s9 + $0x30] sm:$0xff]  ;;  %s2741_s0 = smov (!%p725_p10, %s724_s0), 2 }
  0x30   : > { %2018 = vmatpush3.bf16.msra.mxu0 %v2017_v13  ;;  %v2080_v16 = vpack.c.bf16 %v1043_v12, %v1042_v11  ;;  %v1049_v25 = vld [vmem:[%s2716_s9 + $0x38] sm:$0xff]  ;;  %v1051_v28 = vld [vmem:[%s2716_s9 + $0x48] sm:$0xff]  ;;  %v1056_v38 = vld [vmem:[%s2716_s9 + $0x70] sm:$0xff]  ;;  %s1641_s1 = sshll.u32 %s2741_s0, 7  ;;  %s731_s0 = sld [smem:[#allocation3 + %s2324_s2]] }
  0x31   : > { %2019 = vmatprep.subr.bf16.mxu0 %v2212_v3  ;;  %v2089_v26 = vpack.c.bf16 %v1049_v25, %v1048_v24  ;;  %v1053_v31 = vld [vmem:[%s2716_s9 + $0x58] sm:$0xff]  ;;  %v1055_v34 = vld [vmem:[%s2716_s9 + $0x68] sm:$0xff]  ;;  %s2555_s29 = scalar_lea.vmem %s2718_s11, %s1641_s1  ;;  %v1632_v42 = vld [vmem:[%s722_s26] ss:$0 sm:$0xff]  ;;  %s711_s1 = scalar_lea.vmem %s2736_s23, %s2406_s12 }
  0x32   : > { %2039 = vmatpush3.bf16.msra.mxu1 %v2038_v30  ;;  %v1052_v30 = vld [vmem:[%s2716_s9 + $0x50] sm:$0xff]  ;;  %v964_v37 = vld [vmem:[%s2714_s7 + $0x78] sm:$0xff]  ;;  %v1146_v54 = vld [vmem:[%s2555_s29 + $0x28] sm:$0xff]  ;;  %s751_s23 = scalar_lea.vmem %s2724_s17, %s2406_s12 }
  0x33   : > { %2040 = vmatprep.subr.bf16.mxu1 %v2212_v3  ;;  %v2095_v32 = vpack.c.bf16 %v1053_v31, %v1052_v30  ;;  %v1144_v51 = vld [vmem:[%s2555_s29 + $0x18] sm:$0xff]  ;;  %v1150_v60 = vld [vmem:[%s2555_s29 + $0x48] sm:$0xff]  ;;  %v1237_v11 = vld [vmem:[%s2720_s13 + $0x10] sm:$0xff] }
  0x34   : > { %2021 = vmatpush3.bf16.msra.mxu0 %v2020_v21  ;;  %v1046_v21 = vld [vmem:[%s2716_s9 + $0x20] sm:$0xff]  ;;  %v1148_v57 = vld [vmem:[%s2555_s29 + $0x38] sm:$0xff]  ;;  %v1154_v2 = vld [vmem:[%s2555_s29 + $0x68] sm:$0xff] }
  0x35   : > { %2022 = vmatprep.subr.bf16.mxu0 %v2212_v3  ;;  %v2086_v23 = vpack.c.bf16 %v1047_v22, %v1046_v21  ;;  %v1152_v63 = vld [vmem:[%s2555_s29 + $0x58] sm:$0xff]  ;;  %v1241_v18 = vld [vmem:[%s2720_s13 + $0x30] sm:$0xff]  ;;  %v1243_v21 = vld [vmem:[%s2720_s13 + $0x40] sm:$0xff] }
  0x36   : > { %2042 = vmatpush3.bf16.msra.mxu1 %v2041_v36  ;;  %v963_v36 = vld [vmem:[%s2714_s7 + $0x70] sm:$0xff]  ;;  %v1156_v7 = vld [vmem:[%s2555_s29 + $0x78] sm:$0xff]  ;;  %v1244_v22 = vld [vmem:[%s2720_s13 + $0x48] sm:$0xff]  ;;  %p732_p13 = scmp.lt.s32.totalorder %s731_s0, 2 }
  0x37   : > { %2043 = vmatprep.subr.bf16.mxu1 %v2212_v3  ;;  %v1242_v19 = vld [vmem:[%s2720_s13 + $0x38] sm:$0xff]  ;;  %v1245_v24 = vld [vmem:[%s2720_s13 + $0x50] sm:$0xff]  ;;  %v1633_v30 = vld [vmem:[%s2715_s8] ss:$0 sm:$0xff] }
  0x38   : > { %2024 = vmatpush3.bf16.msra.mxu0 %v2023_v27  ;;  %v1050_v27 = vld [vmem:[%s2716_s9 + $0x40] sm:$0xff]  ;;  %v1246_v25 = vld [vmem:[%s2720_s13 + $0x58] sm:$0xff]  ;;  %s2747_s0 = smov (!%p732_p13, %s731_s0), 2 }
  0x39   : > { %2025 = vmatprep.subr.bf16.mxu0 %v2212_v3  ;;  %v2092_v29 = vpack.c.bf16 %v1051_v28, %v1050_v27  ;;  %v1247_v27 = vld [vmem:[%s2720_s13 + $0x60] sm:$0xff]  ;;  %v1248_v28 = vld [vmem:[%s2720_s13 + $0x68] sm:$0xff]  ;;  %s734_s3 = scalar_lea.vmem %s2737_s25, %s2747_s0 }
  0x3a   : > { %2045 = vmatpush3.bf16.msra.mxu1 %v2044_v40  ;;  %v1057_v40 = vld [vmem:[%s2716_s9 + $0x78] sm:$0xff]  ;;  %v1634_v31 = vld [vmem:[%s2717_s10] ss:$0 sm:$0xff] }
  0x3b   : > { %2046 = vmatprep.subr.bf16.mxu1 %v2212_v3  ;;  %v2101_v41 = vpack.c.bf16 %v1057_v40, %v1056_v38  ;;  %v1135_v40 = vld [vmem:[%s711_s1] sm:$0xff] }
  0x3c   : > { %2027 = vmatpush3.bf16.msra.mxu0 %v2026_v33  ;;  %v1054_v33 = vld [vmem:[%s2716_s9 + $0x60] sm:$0xff] }
  0x3d   : > { %2028 = vmatprep.subr.bf16.mxu0 %v2212_v3  ;;  %v2098_v35 = vpack.c.bf16 %v1055_v34, %v1054_v33 }
  0x3e   : > { %2048 = vmatpush3.bf16.msra.mxu1 %v2047_v44  ;;  %v1142_v44 = vld [vmem:[%s2555_s29 + $0x8] sm:$0xff] }
  0x3f   : > { %2049 = vmatprep.subr.bf16.mxu1 %v2212_v3 }
  0x40   : > { %2030 = vmatpush3.bf16.msra.mxu0 %v2029_v39  ;;  %v2077_v39 = vpack.c.bf16 %v964_v37, %v963_v36 }
  0x41   : > { %2055 = vmatprep.subr.bf16.mxu0 %v2212_v3 }
  0x42   : > { %2051 = vmatpush3.bf16.msra.mxu1 %v2050_v47 }
  0x43   : > { %1795 = vmatmul.mubr.f32.vlgmr.msra.gmra.mrb[0].mxu0 %v760_v43  ;;  %2052 = vmatprep.subr.bf16.mxu1 %v2212_v3  ;;  %v1141_v43 = vld [vmem:[%s2555_s29] sm:$0xff] }
  0x44   : > { %1864 = vmatprep.mubr.msk.f32.mxu0 %vm2213_vm0, %v2214_v6  ;;  %2057 = vmatpush3.bf16.msra.mxu0 %v2056_v53  ;;  %v2104_v48 = vpack.c.bf16 %v1142_v44, %v1141_v43  ;;  %v1145_v53 = vld [vmem:[%s2555_s29 + $0x20] sm:$0xff]  ;;  %v1249_v44 = vld [vmem:[%s2720_s13 + $0x70] sm:$0xff] }
  0x45   : > { %2058 = vmatprep.subr.bf16.mxu0 %v2212_v3  ;;  %v2110_v55 = vpack.c.bf16 %v1146_v54, %v1145_v53 }
  0x46   : > { %2054 = vmatpush3.bf16.msra.mxu1 %v2053_v50  ;;  %v1143_v50 = vld [vmem:[%s2555_s29 + $0x10] sm:$0xff] }
  0x47   : > { %2079 = vmatprep.subr.bf16.mxu1 %v2212_v3  ;;  %v2107_v52 = vpack.c.bf16 %v1144_v51, %v1143_v50 }
  0x48   : > { %2060 = vmatpush3.bf16.msra.mxu0 %v2059_v56  ;;  %v1147_v56 = vld [vmem:[%s2555_s29 + $0x30] sm:$0xff] }
  0x49   : > { %2061 = vmatprep.subr.bf16.mxu0 %v2212_v3  ;;  %v2113_v58 = vpack.c.bf16 %v1148_v57, %v1147_v56 }
  0x4c   : > { %2063 = vmatpush3.bf16.msra.mxu0 %v2062_v59  ;;  %v1149_v59 = vld [vmem:[%s2555_s29 + $0x40] sm:$0xff] }
  0x4d   : > { %2064 = vmatprep.subr.bf16.mxu0 %v2212_v3  ;;  %v2116_v61 = vpack.c.bf16 %v1150_v60, %v1149_v59 }
  0x50   : > { %2066 = vmatpush3.bf16.msra.mxu0 %v2065_v62  ;;  %v1151_v62 = vld [vmem:[%s2555_s29 + $0x50] sm:$0xff] }
  0x51   : > { %2067 = vmatprep.subr.bf16.mxu0 %v2212_v3  ;;  %v2119_v0 = vpack.c.bf16 %v1152_v63, %v1151_v62 }
  0x54   : > { %2069 = vmatpush3.bf16.msra.mxu0 %v2068_v1  ;;  %v1153_v1 = vld [vmem:[%s2555_s29 + $0x60] sm:$0xff] }
  0x55   : > { %2070 = vmatprep.subr.bf16.mxu0 %v2212_v3  ;;  %v2122_v4 = vpack.c.bf16 %v1154_v2, %v1153_v1 }
  0x58   : > { %2072 = vmatpush3.bf16.msra.mxu0 %v2071_v5  ;;  %v1155_v5 = vld [vmem:[%s2555_s29 + $0x70] sm:$0xff] }
  0x59   : > { %2073 = vmatprep.subr.bf16.mxu0 %v2212_v3  ;;  %v2125_v8 = vpack.c.bf16 %v1156_v7, %v1155_v5 }
  0x5c   : > { %2075 = vmatpush3.bf16.msra.mxu0 %v2074_v9  ;;  %v1235_v9 = vld [vmem:[%s2720_s13] sm:$0xff] }
  0x5d   : > { %2076 = vmatprep.subr.bf16.mxu0 %v2212_v3 }
  0x60   : > { %2078 = vmatpush3.bf16.msra.mxu0 %v2077_v39 }
  0x61   : > { %2103 = vmatprep.subr.bf16.mxu0 %v2212_v3 }
 0x116   : > { %v850_v13 = vpop.f32.mrb[0].mxu0 }
 0x117   : > { %v851_v14 = vadd.f32 %v1631_v10, %v850_v13  ;;  %v1796_v15 = vpop.f32.mrb[1].mxu0  ;;  %v1236_v10 = vld [vmem:[%s2720_s13 + $0x8] sm:$0xff]  ;;  %v1238_v13 = vld [vmem:[%s2720_s13 + $0x18] sm:$0xff] }
 0x118   : > { %v2128_v12 = vpack.c.bf16 %v1236_v10, %v1235_v9  ;;  %v1239_v15 = vld [vmem:[%s2720_s13 + $0x20] sm:$0xff] }
 0x119   : > { %v854_v17 = vmax.f32 %v851_v14, 0.0  ;;  %v2131_v14 = vpack.c.bf16 %v1238_v13, %v1237_v11 }
 0x11b   : > { %1830 = vmatmul.mubr.f32.vlgmr.msra.gmra.mrb[0].mxu1 %v854_v17 }
 0x11c   : > { %2081 = vmatpush3.bf16.msra.mxu1 %v2080_v16  ;;  %1899 = vmatprep.mubr.msk.f32.mxu1 %vm2213_vm0, %v2214_v6  ;;  %v1240_v16 = vld [vmem:[%s2720_s13 + $0x28] sm:$0xff] }
 0x11d   : > { %2082 = vmatprep.subr.bf16.mxu1 %v2212_v3  ;;  %v2134_v17 = vpack.c.bf16 %v1240_v16, %v1239_v15 }
 0x120   : > { %2084 = vmatpush3.bf16.msra.mxu1 %v2083_v20  ;;  %v2137_v20 = vpack.c.bf16 %v1242_v19, %v1241_v18 }
 0x121   : > { %2085 = vmatprep.subr.bf16.mxu1 %v2212_v3 }
 0x124   : > { %2087 = vmatpush3.bf16.msra.mxu1 %v2086_v23  ;;  %v2140_v23 = vpack.c.bf16 %v1244_v22, %v1243_v21 }
 0x125   : > { %2088 = vmatprep.subr.bf16.mxu1 %v2212_v3 }
 0x128   : > { %2090 = vmatpush3.bf16.msra.mxu1 %v2089_v26  ;;  %v2143_v26 = vpack.c.bf16 %v1246_v25, %v1245_v24 }
 0x129   : > { %2091 = vmatprep.subr.bf16.mxu1 %v2212_v3 }
 0x12c   : > { %2093 = vmatpush3.bf16.msra.mxu1 %v2092_v29  ;;  %v2146_v29 = vpack.c.bf16 %v1248_v28, %v1247_v27 }
 0x12d   : > { %2094 = vmatprep.subr.bf16.mxu1 %v2212_v3 }
 0x130   : > { %2096 = vmatpush3.bf16.msra.mxu1 %v2095_v32 }
 0x131   : > { %2097 = vmatprep.subr.bf16.mxu1 %v2212_v3 }
 0x134   : > { %2099 = vmatpush3.bf16.msra.mxu1 %v2098_v35 }
 0x135   : > { %2100 = vmatprep.subr.bf16.mxu1 %v2212_v3 }
 0x138   : > { %2102 = vmatpush3.bf16.msra.mxu1 %v2101_v41 }
 0x139   : > { %2127 = vmatprep.subr.bf16.mxu1 %v2212_v3 }
 0x1ee   : > { %v944_v45 = vpop.f32.mrb[0].mxu1 }
 0x1ef   : > { %v945_v46 = vadd.f32 %v1632_v42, %v944_v45  ;;  %v1831_v47 = vpop.f32.mrb[1].mxu1  ;;  %v1250_v45 = vld [vmem:[%s2720_s13 + $0x78] sm:$0xff] }
 0x1f1   : > { %v948_v49 = vmax.f32 %v945_v46, 0.0  ;;  %v2149_v46 = vpack.c.bf16 %v1250_v45, %v1249_v44 }
 0x1f3   : > { %1865 = vmatmul.mubr.f32.vlgmr.msra.gmra.mrb[2].mxu0 %v948_v49  ;;  %1900 = vmatmul.mubr.f32.vlgmr.msra.gmra.mrb[2].mxu1 %v948_v49 }
 0x1f4   : > { %2105 = vmatpush3.bf16.msra.mxu0 %v2104_v48  ;;  %1934 = vmatprep.mubr.msk.f32.mxu0 %vm2213_vm0, %v2214_v6 }
 0x1f5   : > { %2106 = vmatprep.subr.bf16.mxu0 %v2212_v3  ;;  %1969 = vmatprep.mubr.msk.f32.mxu1 %vm2213_vm0, %v2214_v6 }
 0x1f6   : > { %2129 = vmatpush3.bf16.msra.mxu1 %v2128_v12 }
 0x1f7   : > { %2130 = vmatprep.subr.bf16.mxu1 %v2212_v3 }
 0x1f8   : > { %2108 = vmatpush3.bf16.msra.mxu0 %v2107_v52 }
 0x1f9   : > { %2109 = vmatprep.subr.bf16.mxu0 %v2212_v3 }
 0x1fa   : > { %2132 = vmatpush3.bf16.msra.mxu1 %v2131_v14 }
 0x1fb   : > { %2133 = vmatprep.subr.bf16.mxu1 %v2212_v3 }
 0x1fc   : > { %2111 = vmatpush3.bf16.msra.mxu0 %v2110_v55 }
 0x1fd   : > { %2112 = vmatprep.subr.bf16.mxu0 %v2212_v3 }
 0x1fe   : > { %2135 = vmatpush3.bf16.msra.mxu1 %v2134_v17 }
 0x1ff   : > { %2136 = vmatprep.subr.bf16.mxu1 %v2212_v3 }
 0x200   : > { %2114 = vmatpush3.bf16.msra.mxu0 %v2113_v58 }
 0x201   : > { %2115 = vmatprep.subr.bf16.mxu0 %v2212_v3 }
 0x202   : > { %2138 = vmatpush3.bf16.msra.mxu1 %v2137_v20 }
 0x203   : > { %2139 = vmatprep.subr.bf16.mxu1 %v2212_v3 }
 0x204   : > { %2117 = vmatpush3.bf16.msra.mxu0 %v2116_v61 }
 0x205   : > { %2118 = vmatprep.subr.bf16.mxu0 %v2212_v3 }
 0x206   : > { %2141 = vmatpush3.bf16.msra.mxu1 %v2140_v23 }
 0x207   : > { %2142 = vmatprep.subr.bf16.mxu1 %v2212_v3 }
 0x208   : > { %2120 = vmatpush3.bf16.msra.mxu0 %v2119_v0 }
 0x209   : > { %2121 = vmatprep.subr.bf16.mxu0 %v2212_v3 }
 0x20a   : > { %2144 = vmatpush3.bf16.msra.mxu1 %v2143_v26 }
 0x20b   : > { %2145 = vmatprep.subr.bf16.mxu1 %v2212_v3 }
 0x20c   : > { %2123 = vmatpush3.bf16.msra.mxu0 %v2122_v4  ;;  %v1635_v4 = vld [vmem:[%s734_s3] ss:$0 sm:$0xff] }
 0x20d   : > { %2124 = vmatprep.subr.bf16.mxu0 %v2212_v3 }
 0x20e   : > { %2147 = vmatpush3.bf16.msra.mxu1 %v2146_v29 }
 0x20f   : > { %2148 = vmatprep.subr.bf16.mxu1 %v2212_v3 }
 0x210   : > { %2126 = vmatpush3.bf16.msra.mxu0 %v2125_v8 }
 0x211   : > { %2151 = vmatprep.subr.bf16.mxu0 %v2212_v3 }
 0x212   : > { %2150 = vmatpush3.bf16.msra.mxu1 %v2149_v46 }
 0x2c6   : > { %v1038_v32 = vpop.f32.mrb[2].mxu0  ;;  %v1131_v33 = vpop.f32.mrb[2].mxu1 }
 0x2c7   : > { %v1039_v34 = vadd.f32 %v1633_v30, %v1038_v32  ;;  %v1132_v35 = vadd.f32 %v1634_v31, %v1131_v33  ;;  %v1866_v36 = vpop.f32.mrb[3].mxu0  ;;  %v1901_v37 = vpop.f32.mrb[3].mxu1 }
 0x2c9   : > { %1423 = vst [vmem:[%s755_s28] sm:$0xff] %v1039_v34  ;;  %v1136_v38 = vmul.f32 0.5, %v1132_v35  ;;  %1424 = vst [vmem:[%s759_s20] sm:$0xff] %v1132_v35  ;;  %s736_s28 = sld [smem:[#allocation3 + %s2324_s2]] }
 0x2cb   : > { %v1137_v39 = vmul.f32 1.442695, %v1136_v38 }
 0x2cd   : > { %2187 = vpow2.f32 %v1137_v39 }
 0x2cf   : > { %p737_p12 = scmp.lt.s32.totalorder %s736_s28, 2 }
 0x2d1   : > { %s2745_s28 = smov (!%p737_p12, %s736_s28), 2 }
 0x2d2   : > { %s1642_s29 = sshll.u32 %s2745_s28, 7  ;;  %s743_s28 = sld [smem:[#allocation3 + %s2324_s2]] }
 0x2d3   : > { %s2664_s21 = scalar_lea.vmem %s2722_s15, %s1642_s29 }
 0x2d4   : > { %v1330_v47 = vld [vmem:[%s2664_s21 + $0x8] sm:$0xff]  ;;  %v1331_v48 = vld [vmem:[%s2664_s21 + $0x10] sm:$0xff]  ;;  %v1332_v50 = vld [vmem:[%s2664_s21 + $0x18] sm:$0xff] }
 0x2d5   : > { %v2155_v51 = vpack.c.bf16 %v1332_v50, %v1331_v48  ;;  %v1333_v52 = vld [vmem:[%s2664_s21 + $0x20] sm:$0xff]  ;;  %v1334_v53 = vld [vmem:[%s2664_s21 + $0x28] sm:$0xff]  ;;  %v1335_v55 = vld [vmem:[%s2664_s21 + $0x30] sm:$0xff] }
 0x2d6   : > { %v2158_v54 = vpack.c.bf16 %v1334_v53, %v1333_v52  ;;  %v1336_v56 = vld [vmem:[%s2664_s21 + $0x38] sm:$0xff]  ;;  %v1337_v58 = vld [vmem:[%s2664_s21 + $0x40] sm:$0xff]  ;;  %v1338_v59 = vld [vmem:[%s2664_s21 + $0x48] sm:$0xff] }
 0x2d7   : > { %v2188_v41 = vpop.eup %2187  ;;  %v2161_v57 = vpack.c.bf16 %v1336_v56, %v1335_v55  ;;  %v2164_v60 = vpack.c.bf16 %v1338_v59, %v1337_v58  ;;  %v1339_v61 = vld [vmem:[%s2664_s21 + $0x50] sm:$0xff]  ;;  %v1340_v62 = vld [vmem:[%s2664_s21 + $0x58] sm:$0xff]  ;;  %v1341_v0 = vld [vmem:[%s2664_s21 + $0x60] sm:$0xff] }
 0x2d8   : > { %v1139_v42 = vmul.f32 %v2188_v41, %v1135_v40  ;;  %v2167_v63 = vpack.c.bf16 %v1340_v62, %v1339_v61  ;;  %v1342_v1 = vld [vmem:[%s2664_s21 + $0x68] sm:$0xff]  ;;  %v1343_v10 = vld [vmem:[%s2664_s21 + $0x70] sm:$0xff]  ;;  %v1344_v11 = vld [vmem:[%s2664_s21 + $0x78] sm:$0xff]  ;;  %p744_p0 = scmp.lt.s32.totalorder %s743_s28, 2 }
 0x2d9   : > { %v2170_v2 = vpack.c.bf16 %v1342_v1, %v1341_v0  ;;  %v2173_v12 = vpack.c.bf16 %v1344_v11, %v1343_v10 }
 0x2da   : > { %v1140_v43 = vadd.f32 %v1139_v42, %v1039_v34  ;;  %s2749_s28 = smov (!%p744_p0, %s743_s28), 2 }
 0x2db   : > { %s746_s20 = scalar_lea.vmem %s2723_s16, %s2749_s28 }
 0x2dc   : > { %1935 = vmatmul.mubr.f32.vlgmr.msra.gmra.mrb[4].mxu0 %v1140_v43  ;;  %v1637_v17 = vld [vmem:[%s746_s20] ss:$0 sm:$0xff] }
 0x2dd   : > { %2004 = vmatprep.mubr.msk.f32.mxu0 %vm2213_vm0, %v2214_v6  ;;  %v1329_v6 = vld [vmem:[%s2664_s21] sm:$0xff] }
 0x2de   : > { %v2152_v49 = vpack.c.bf16 %v1330_v47, %v1329_v6 }
 0x2e0   : > { %2153 = vmatpush3.bf16.msra.mxu0 %v2152_v49 }
 0x2e1   : > { %2154 = vmatprep.subr.bf16.mxu0 %v2212_v3 }
 0x2e4   : > { %2156 = vmatpush3.bf16.msra.mxu0 %v2155_v51 }
 0x2e5   : > { %2157 = vmatprep.subr.bf16.mxu0 %v2212_v3 }
 0x2e8   : > { %2159 = vmatpush3.bf16.msra.mxu0 %v2158_v54 }
 0x2e9   : > { %2160 = vmatprep.subr.bf16.mxu0 %v2212_v3 }
 0x2ec   : > { %2162 = vmatpush3.bf16.msra.mxu0 %v2161_v57 }
 0x2ed   : > { %2163 = vmatprep.subr.bf16.mxu0 %v2212_v3 }
 0x2f0   : > { %2165 = vmatpush3.bf16.msra.mxu0 %v2164_v60 }
 0x2f1   : > { %2166 = vmatprep.subr.bf16.mxu0 %v2212_v3 }
 0x2f4   : > { %2168 = vmatpush3.bf16.msra.mxu0 %v2167_v63 }
 0x2f5   : > { %2169 = vmatprep.subr.bf16.mxu0 %v2212_v3 }
 0x2f8   : > { %2171 = vmatpush3.bf16.msra.mxu0 %v2170_v2 }
 0x2f9   : > { %2172 = vmatprep.subr.bf16.mxu0 %v2212_v3  ;;  %v1636_v3 = vld [vmem:[%s2721_s14] ss:$0 sm:$0xff] }
 0x2fc   : > { %2174 = vmatpush3.bf16.msra.mxu0 %v2173_v12 }
 0x3af   : > { %v1230_v5 = vpop.f32.mrb[4].mxu0 }
 0x3b0   : > { %v1231_v7 = vadd.f32 %v1635_v4, %v1230_v5  ;;  %v1936_v8 = vpop.f32.mrb[5].mxu0 }
 0x3b2   : > { %v1234_v9 = vmax.f32 %v1231_v7, 0.0 }
 0x3b4   : > { %1970 = vmatmul.mubr.f32.vlgmr.msra.gmra.mrb[4].mxu1 %v1234_v9 }
 0x487   : > { %v1324_v13 = vpop.f32.mrb[4].mxu1 }
 0x488   : > { %v1325_v14 = vadd.f32 %v1636_v3, %v1324_v13  ;;  %v1971_v15 = vpop.f32.mrb[5].mxu1 }
 0x48a   : > { %v1328_v16 = vmax.f32 %v1325_v14, 0.0 }
 0x48c   : > { %2005 = vmatmul.mubr.f32.vlgmr.msra.gmra.mrb[6].mxu0 %v1328_v16 }
 0x55f   : > { %v1418_v18 = vpop.f32.mrb[6].mxu0 }
 0x560   : > { %v1419_v19 = vadd.f32 %v1637_v17, %v1418_v18  ;;  %v2006_v20 = vpop.f32.mrb[7].mxu0 }
 0x562   : > { %1422 = vst [vmem:[%s751_s23] sm:$0xff] %v1419_v19 }
 0x563 PF: > { %s36_s22 = sadd.s32 1, %s2209_s22  }
 0x564   : > { %p33_p1 = scmp.ge.s32.totalorder %s36_s22, 6  }
 0x566   :  { %35 = sbr.rel (!%p33_p1) target bundleno = 23 (0x17), region = 159 }

</bundles_post_ra>
